<compile_context>
chip_gen: v5e
topology: v5e:2x2
jax: 0.10.0
libtpu: 0.0.40
codegen_flags: <defaults>
</compile_context>

<pallas_src>
import functools

import jax
import jax.numpy as jnp
from jax import lax
from jax.experimental import pallas as pl
from jax.experimental.pallas import tpu as pltpu


_VMEM_LIMIT_BYTES = 32 * 1024 * 1024          # safe on v5e / v6e / v7x
_DEFAULT_RESIDENT_KV_BYTES = 8 * 1024 * 1024  # k+v, double-buffered, per step


def _pick_tile(total, target, step=8):
    """Largest multiple-of-`step` divisor of `total` that is <= target.

    Falls back to `total` itself (full-extent block, always legal) when no
    such divisor exists.
    """
    t = min(int(target), int(total))
    t -= t % step
    while t >= step and total % t != 0:
        t -= step
    if t >= step and total % t == 0:
        return t
    return int(total)


def _fused_attn_kernel(q_ref, k_ref, v_ref, o_ref, *, scale, compute_dtype):
    """Small-Sk path: full K/V resident, plain softmax per (b*h, q-tile) step.

    q_ref: (tq, D)   k_ref, v_ref: (Sk, D)   o_ref: (tq, D)
    """
    q = (q_ref[...] * scale).astype(compute_dtype)      # fold 1/sqrt(D) into q
    k = k_ref[...].astype(compute_dtype)
    s = lax.dot_general(
        q, k, (((1,), (1,)), ((), ())), preferred_element_type=jnp.float32
    )                                                    # (tq, Sk) f32
    m = s.max(axis=-1, keepdims=True)
    p = jnp.exp(s - m)
    l = p.sum(axis=-1, keepdims=True)
    pv = jnp.dot(
        p.astype(compute_dtype), v_ref[...].astype(compute_dtype),
        preferred_element_type=jnp.float32,
    )                                                    # (tq, D) f32
    o_ref[...] = (pv * pl.reciprocal(l, approx=True)).astype(o_ref.dtype)


def _flash_attn_kernel(q_ref, k_ref, v_ref, o_ref, m_sc, l_sc, acc_sc, *,
                       scale, compute_dtype):
    """One (batch*head, q-tile, kv-tile) grid step of online-softmax attention.

    q_ref: (tq, D)   k_ref, v_ref: (tk, D)   o_ref: (tq, D)
    m_sc, l_sc: (tq, 1) f32 running max / softmax denominator
    acc_sc:     (tq, D) f32 un-normalized output accumulator
    """
    ki = pl.program_id(2)

    @pl.when(ki == 0)
    def _init():
        m_sc[...] = jnp.full_like(m_sc, -jnp.inf)
        l_sc[...] = jnp.zeros_like(l_sc)
        acc_sc[...] = jnp.zeros_like(acc_sc)

    # Fold 1/sqrt(D) into the (tq, D) q tile (cheaper than scaling (tq, tk) s).
    q = (q_ref[...] * scale).astype(compute_dtype)
    k = k_ref[...].astype(compute_dtype)
    # s[i, j] = <q_i, k_j>: contract the feature axis of both (q @ k^T).
    s = lax.dot_general(
        q, k, (((1,), (1,)), ((), ())), preferred_element_type=jnp.float32
    )                                                    # (tq, tk) f32

    m_prev = m_sc[...]
    m_new = jnp.maximum(m_prev, s.max(axis=-1, keepdims=True))   # (tq, 1)
    alpha = jnp.exp(m_prev - m_new)                              # rescale old stats
    p = jnp.exp(s - m_new)                                       # (tq, tk)

    l_sc[...] = alpha * l_sc[...] + p.sum(axis=-1, keepdims=True)
    acc_sc[...] = alpha * acc_sc[...] + jnp.dot(
        p.astype(compute_dtype), v_ref[...].astype(compute_dtype),
        preferred_element_type=jnp.float32,
    )
    m_sc[...] = m_new

    @pl.when(ki == pl.num_programs(2) - 1)
    def _finalize():
        inv_l = pl.reciprocal(l_sc[...], approx=True)
        o_ref[...] = (acc_sc[...] * inv_l).astype(o_ref.dtype)


def attention_forward(q, k, v, mask=None, *, block_q=256, block_kv=256,
                      compute_dtype=jnp.bfloat16,
                      max_resident_kv_bytes=_DEFAULT_RESIDENT_KV_BYTES):
    """Mirrors Attention.forward: softmax(q @ k^T / sqrt(D)) @ v.

    q: (B, H, Sq, D); k, v: (B, H, Sk, D). Returns (B, H, Sq, D).
    """
    if mask is not None:
        # TODO(synk): attn_mask path (masked_fill(~mask, -inf)) not implemented.
        raise NotImplementedError("mask is not supported by this Pallas kernel")

    B, H, Sq, D = q.shape
    Sk = k.shape[2]
    assert k.shape == (B, H, Sk, D) and v.shape == (B, H, Sk, D)

    BH = B * H
    q3 = q.reshape(BH, Sq, D)
    k3 = k.reshape(BH, Sk, D)
    v3 = v.reshape(BH, Sk, D)

    scale = float(D) ** -0.5
    tq = _pick_tile(Sq, block_q)

    # Estimated VMEM for keeping all of K and V resident (double-buffered).
    kv_itemsize = jnp.dtype(k.dtype).itemsize
    resident_kv_bytes = 2 * 2 * Sk * D * kv_itemsize

    if resident_kv_bytes <= max_resident_kv_bytes:
        # ---- small-Sk fast path: no kv grid axis, plain softmax in-kernel ----
        grid = (BH, Sq // tq)
        out = pl.pallas_call(
            functools.partial(_fused_attn_kernel, scale=scale,
                              compute_dtype=compute_dtype),
            out_shape=jax.ShapeDtypeStruct((BH, Sq, D), q.dtype),
            grid_spec=pltpu.PrefetchScalarGridSpec(
                num_scalar_prefetch=0,
                grid=grid,
                in_specs=[
                    pl.BlockSpec((None, tq, D), lambda b, qi: (b, qi, 0)),  # q
                    pl.BlockSpec((None, Sk, D), lambda b, qi: (b, 0, 0)),   # k (resident)
                    pl.BlockSpec((None, Sk, D), lambda b, qi: (b, 0, 0)),   # v (resident)
                ],
                out_specs=pl.BlockSpec((None, tq, D), lambda b, qi: (b, qi, 0)),
            ),
            compiler_params=pltpu.CompilerParams(
                dimension_semantics=("parallel", "parallel"),
                vmem_limit_bytes=_VMEM_LIMIT_BYTES,
            ),
        )(q3, k3, v3)
    else:
        # ---- long-Sk flash path: online softmax over kv tiles ----
        tk = _pick_tile(Sk, block_kv)
        grid = (BH, Sq // tq, Sk // tk)
        out = pl.pallas_call(
            functools.partial(_flash_attn_kernel, scale=scale,
                              compute_dtype=compute_dtype),
            out_shape=jax.ShapeDtypeStruct((BH, Sq, D), q.dtype),
            grid_spec=pltpu.PrefetchScalarGridSpec(
                num_scalar_prefetch=0,
                grid=grid,
                in_specs=[
                    pl.BlockSpec((None, tq, D), lambda b, qi, ki: (b, qi, 0)),  # q
                    pl.BlockSpec((None, tk, D), lambda b, qi, ki: (b, ki, 0)),  # k
                    pl.BlockSpec((None, tk, D), lambda b, qi, ki: (b, ki, 0)),  # v
                ],
                out_specs=pl.BlockSpec((None, tq, D), lambda b, qi, ki: (b, qi, 0)),
                scratch_shapes=[
                    pltpu.VMEM((tq, 1), jnp.float32),   # running max m_i
                    pltpu.VMEM((tq, 1), jnp.float32),   # running denom l_i
                    pltpu.VMEM((tq, D), jnp.float32),   # output accumulator
                ],
            ),
            compiler_params=pltpu.CompilerParams(
                dimension_semantics=("parallel", "parallel", "arbitrary"),
                vmem_limit_bytes=_VMEM_LIMIT_BYTES,
            ),
        )(q3, k3, v3)

    return out.reshape(B, H, Sq, D)


if __name__ == "__main__":
    key = jax.random.PRNGKey(0)
    kq, kk, kv = jax.random.split(key, 3)

    # Small shapes consistent with the module: batch=2, heads=4, seq=128, dim=64.
    B, H, S, D = 2, 4, 128, 64
    q = jax.random.normal(kq, (B, H, S, D), dtype=jnp.float32)
    k = jax.random.normal(kk, (B, H, S, D), dtype=jnp.float32)
    v = jax.random.normal(kv, (B, H, S, D), dtype=jnp.float32)

    # Pure-JAX f32 reference of the forward semantics (mask=None path).
    sim = jnp.einsum("bhid,bhjd->bhij", q, k) * (D ** -0.5)
    ref = jnp.einsum("bhij,bhjd->bhid", jax.nn.softmax(sim, axis=-1), v)

    # 1) default path: K/V fit in VMEM -> fused single-pass kernel.
    out_fused = jax.block_until_ready(attention_forward(q, k, v))

    # 2) force the flash path (kv tiled, online softmax) to exercise it too.
    out_flash = jax.block_until_ready(
        attention_forward(q, k, v, block_q=64, block_kv=64,
                          max_resident_kv_bytes=0)
    )

    assert out_fused.shape == (B, H, S, D)
    assert out_flash.shape == (B, H, S, D)

    # bf16 MXU operands -> relaxed tolerance vs the f32 reference.
    err_fused = float(jnp.max(jnp.abs(out_fused - ref)))
    err_flash = float(jnp.max(jnp.abs(out_flash - ref)))
    assert jnp.allclose(out_fused, ref, atol=5e-2, rtol=5e-2), err_fused
    assert jnp.allclose(out_flash, ref, atol=5e-2, rtol=5e-2), err_flash

    print("KERNEL_OK")
</pallas_src>

<mosaic_0001>
module attributes {stable_mosaic.version = 11 : i64} {
  func.func @_fused_attn_kernel(%arg0: i32, %arg1: i32, %arg2: memref<1x128x64xf32, #tpu.memory_space<vmem>>, %arg3: memref<1x128x64xf32, #tpu.memory_space<vmem>>, %arg4: memref<1x128x64xf32, #tpu.memory_space<vmem>>, %arg5: memref<1x128x64xf32, #tpu.memory_space<vmem>>) attributes {dimension_semantics = [#tpu.dimension_semantics<parallel>, #tpu.dimension_semantics<parallel>], iteration_bounds = array<i64: 8, 1>, scalar_prefetch = 0 : i64, scratch_operands = 0 : i64, tpu.core_type = #tpu.core_type<tc>, window_params = [{transform_indices = @transform_0, window_bounds = array<i64: 1, 128, 64>}, {transform_indices = @transform_1, window_bounds = array<i64: 1, 128, 64>}, {transform_indices = @transform_2, window_bounds = array<i64: 1, 128, 64>}, {transform_indices = @transform_3, window_bounds = array<i64: 1, 128, 64>}]} {
    %c0 = arith.constant 0 : index
    %c0_0 = arith.constant 0 : index
    %c0_1 = arith.constant 0 : index
    %0 = vector.load %arg2[%c0, %c0_0, %c0_1] : memref<1x128x64xf32, #tpu.memory_space<vmem>>, vector<1x128x64xf32>
    %1 = vector.shape_cast %0 : vector<1x128x64xf32> to vector<128x64xf32>
    %cst = arith.constant 1.250000e-01 : f32
    %2 = vector.broadcast %cst : f32 to vector<128x64xf32>
    %3 = arith.mulf %1, %2 : vector<128x64xf32>
    %4 = arith.truncf %3 : vector<128x64xf32> to vector<128x64xbf16>
    %c0_2 = arith.constant 0 : index
    %c0_3 = arith.constant 0 : index
    %c0_4 = arith.constant 0 : index
    %5 = vector.load %arg3[%c0_2, %c0_3, %c0_4] : memref<1x128x64xf32, #tpu.memory_space<vmem>>, vector<1x128x64xf32>
    %6 = vector.shape_cast %5 : vector<1x128x64xf32> to vector<128x64xf32>
    %7 = arith.truncf %6 : vector<128x64xf32> to vector<128x64xbf16>
    %cst_5 = arith.constant dense<0.000000e+00> : vector<128x128xf32>
    %8 = tpu.matmul %4, %7, %cst_5 {dimension_numbers = #tpu.dot_dimension_numbers<[1], [1], [0], [0], [0, 0, 1, 0], [], []>} : vector<128x64xbf16>, vector<128x64xbf16>, vector<128x128xf32> -> vector<128x128xf32>
    %cst_6 = arith.constant dense<0xFF800000> : vector<128xf32>
    %9 = vector.multi_reduction <maximumf>, %8, %cst_6 [1] : vector<128x128xf32> to vector<128xf32>
    %10 = vector.shape_cast %9 : vector<128xf32> to vector<128x1xf32>
    %11 = vector.broadcast %10 : vector<128x1xf32> to vector<128x128xf32>
    %12 = arith.subf %8, %11 : vector<128x128xf32>
    %13 = math.exp %12 : vector<128x128xf32>
    %cst_7 = arith.constant dense<0.000000e+00> : vector<128xf32>
    %14 = vector.multi_reduction <add>, %13, %cst_7 [1] : vector<128x128xf32> to vector<128xf32>
    %15 = vector.shape_cast %14 : vector<128xf32> to vector<128x1xf32>
    %16 = arith.truncf %13 : vector<128x128xf32> to vector<128x128xbf16>
    %c0_8 = arith.constant 0 : index
    %c0_9 = arith.constant 0 : index
    %c0_10 = arith.constant 0 : index
    %17 = vector.load %arg4[%c0_8, %c0_9, %c0_10] : memref<1x128x64xf32, #tpu.memory_space<vmem>>, vector<1x128x64xf32>
    %18 = vector.shape_cast %17 : vector<1x128x64xf32> to vector<128x64xf32>
    %19 = arith.truncf %18 : vector<128x64xf32> to vector<128x64xbf16>
    %cst_11 = arith.constant dense<0.000000e+00> : vector<128x64xf32>
    %20 = tpu.matmul %16, %19, %cst_11 {dimension_numbers = #tpu.dot_dimension_numbers<[1], [0], [0], [1], [0, 0, 1, 1], [], []>} : vector<128x128xbf16>, vector<128x64xbf16>, vector<128x64xf32> -> vector<128x64xf32>
    %21 = tpu.reciprocal %15 {approx = true} : vector<128x1xf32> -> vector<128x1xf32>
    %22 = vector.broadcast %21 : vector<128x1xf32> to vector<128x64xf32>
    %23 = arith.mulf %20, %22 : vector<128x64xf32>
    %c0_12 = arith.constant 0 : index
    %c0_13 = arith.constant 0 : index
    %c0_14 = arith.constant 0 : index
    %24 = vector.load %arg5[%c0_12, %c0_13, %c0_14] : memref<1x128x64xf32, #tpu.memory_space<vmem>>, vector<1x128x64xf32>
    %25 = vector.shape_cast %24 : vector<1x128x64xf32> to vector<128x64xf32>
    %26 = vector.shape_cast %23 : vector<128x64xf32> to vector<1x128x64xf32>
    tpu.vector_store %arg5[%c0_12, %c0_13, %c0_14], %26 {strides = array<i32>} : memref<1x128x64xf32, #tpu.memory_space<vmem>>, vector<1x128x64xf32>,
    return
  }
  func.func @transform_0(%arg0: i32, %arg1: i32) -> (i32, i32, i32) {
    %c0_i32 = arith.constant 0 : i32
    %c0_i32_0 = arith.constant 0 : i32
    return %arg0, %arg1, %c0_i32 : i32, i32, i32
  }
  func.func @transform_1(%arg0: i32, %arg1: i32) -> (i32, i32, i32) {
    %c0_i32 = arith.constant 0 : i32
    %c0_i32_0 = arith.constant 0 : i32
    %c0_i32_1 = arith.constant 0 : i32
    return %arg0, %c0_i32, %c0_i32_0 : i32, i32, i32
  }
  func.func @transform_2(%arg0: i32, %arg1: i32) -> (i32, i32, i32) {
    %c0_i32 = arith.constant 0 : i32
    %c0_i32_0 = arith.constant 0 : i32
    %c0_i32_1 = arith.constant 0 : i32
    return %arg0, %c0_i32, %c0_i32_0 : i32, i32, i32
  }
  func.func @transform_3(%arg0: i32, %arg1: i32) -> (i32, i32, i32) {
    %c0_i32 = arith.constant 0 : i32
    %c0_i32_0 = arith.constant 0 : i32
    return %arg0, %arg1, %c0_i32 : i32, i32, i32
  }
}

</mosaic_0001>

<bundles_post_ra>
// kernel: tpu_custom_call.1
= control target key start
LH: loop header
LB: loop body
LE: loop exit
PB: predicated region body
PF: predicated region fallthrough
CT: control target
= control target key end

     0   :  { %s939_s12 = smov 0   ;;  %s941_s13 = smov 0   ;;  %s1152_s0 = inlined_call_operand.vmem [shape: f32[8,128,64], index: 0, kind: input, shape index: {}]   ;;  %s1153_s1 = inlined_call_operand.vmem [shape: f32[8,128,64], index: 1, kind: input, shape index: {}]   ;;  %s1154_s2 = inlined_call_operand.vmem [shape: f32[8,128,64], index: 2, kind: input, shape index: {}]   ;;  %s1155_s3 = inlined_call_operand.vmem [shape: f32[8,128,64], index: 3, kind: output, shape index: {}]  }
   0x1   :  { %s943_s14 = smov 0  }
   0x2 LB: > { %s25_s15 = sadd.s32 1, %s913_s13  ;;  %p768_p0 = scmp.ge.s32.totalorder %s917_s14, 1  ;;  %s917_s14 = sphi %s943_s14, %s13_s14   ;;  %s913_s13 = sphi %s941_s13, %s1157_s13   ;;  %s909_s12 = sphi %s939_s12, %s1156_s12  }
   0x3   : > { %p27_p1 = scmp.ge.s32.totalorder %s25_s15, 8  ;;  %p178_p2 = scmp.lt.s32.totalorder %s917_s14, 9 }
   0x5   : > { %s1159_s15 = smov (%p27_p1, %s25_s15), 0  ;;  %p179_p3 = pnand %p768_p0, %p178_p2 }
   0x6   : > { %p221_p4 = scmp.lt.s32.totalorder (!%p179_p3), %s909_s12, 7 }
   0x7   : > { %182 = sbr.rel (%p179_p3) target bundleno = 559 (0x22f), region = 32 }
   0xc   : > { %s1161_s12 = smov (!%p221_p4, %s909_s12), 7  ;;  %vm314_vm0 = vcmask 523264  }
   0xd   : > { %s957_s16 = sshll.u32 %s1161_s12, 7 }
   0xe   : > { %s963_s19 = scalar_lea.vmem %s1153_s1, %s957_s16  ;;  %s992_s22 = scalar_lea.vmem %s1152_s0, %s957_s16 }
   0xf   : > { %v304_v0 = vld [vmem:[%s963_s19 + $0x70] sm:$0xff]  ;;  %v305_v1 = vld [vmem:[%s963_s19 + $0x78] sm:$0xff]  ;;  %v302_v3 = vld [vmem:[%s963_s19 + $0x60] sm:$0xff]  ;;  %s1052_s25 = scalar_lea.vmem %s1154_s2, %s957_s16  ;;  %s1109_s28 = scalar_lea.vmem %s1155_s3, %s957_s16 }
  0x10   : > { %v313_v2 = vpack.c.bf16 %v305_v1, %v304_v0  ;;  %v303_v4 = vld [vmem:[%s963_s19 + $0x68] sm:$0xff]  ;;  %v300_v8 = vld [vmem:[%s963_s19 + $0x50] sm:$0xff]  ;;  %v301_v9 = vld [vmem:[%s963_s19 + $0x58] sm:$0xff] }
  0x11   : > { %v312_v6 = vpack.c.bf16 %v303_v4, %v302_v3  ;;  %v311_v10 = vpack.c.bf16 %v301_v9, %v300_v8  ;;  %v298_v12 = vld [vmem:[%s963_s19 + $0x40] sm:$0xff]  ;;  %v299_v13 = vld [vmem:[%s963_s19 + $0x48] sm:$0xff]  ;;  %v296_v16 = vld [vmem:[%s963_s19 + $0x30] sm:$0xff] }
  0x12   : > { %v361_v5 = vsel %vm314_vm0, %v313_v2, 0  ;;  %v310_v14 = vpack.c.bf16 %v299_v13, %v298_v12  ;;  %v297_v17 = vld [vmem:[%s963_s19 + $0x38] sm:$0xff]  ;;  %v294_v20 = vld [vmem:[%s963_s19 + $0x20] sm:$0xff]  ;;  %v295_v21 = vld [vmem:[%s963_s19 + $0x28] sm:$0xff] }
  0x13   : > { %363 = vmatpush.bf16.xpose.msra.mxu0 %v361_v5  ;;  %791 = vmatpush.bf16.xpose.msra.mxu2 %v361_v5  ;;  %v358_v7 = vsel %vm314_vm0, %v312_v6, 0  ;;  %v355_v11 = vsel %vm314_vm0, %v311_v10, 0  ;;  %v309_v18 = vpack.c.bf16 %v297_v17, %v296_v16  ;;  %v308_v22 = vpack.c.bf16 %v295_v21, %v294_v20  ;;  %v292_v24 = vld [vmem:[%s963_s19 + $0x10] sm:$0xff]  ;;  %v293_v25 = vld [vmem:[%s963_s19 + $0x18] sm:$0xff]  ;;  %v290_v28 = vld [vmem:[%s963_s19] sm:$0xff] }
  0x14   : > { %v352_v15 = vsel %vm314_vm0, %v310_v14, 0  ;;  %v307_v26 = vpack.c.bf16 %v293_v25, %v292_v24  ;;  %v291_v29 = vld [vmem:[%s963_s19 + $0x8] sm:$0xff]  ;;  %v250_v31 = vld [vmem:[%s992_s22] sm:$0xff]  ;;  %v256_v33 = vld [vmem:[%s992_s22 + $0x30] sm:$0xff] }
  0x15   : > { %v349_v19 = vsel %vm314_vm0, %v309_v18, 0  ;;  %v346_v23 = vsel %vm314_vm0, %v308_v22, 0  ;;  %v306_v30 = vpack.c.bf16 %v291_v29, %v290_v28  ;;  %v251_v32 = vld [vmem:[%s992_s22 + $0x8] sm:$0xff]  ;;  %v257_v34 = vld [vmem:[%s992_s22 + $0x38] sm:$0xff]  ;;  %v266_v36 = vmul.f32 0.125, %v250_v31  ;;  %v252_v42 = vld [vmem:[%s992_s22 + $0x10] sm:$0xff] }
  0x16   : > { %v343_v27 = vsel %vm314_vm0, %v307_v26, 0  ;;  %v267_v37 = vmul.f32 0.125, %v251_v32  ;;  %v272_v38 = vmul.f32 0.125, %v256_v33  ;;  %v273_v39 = vmul.f32 0.125, %v257_v34  ;;  %v253_v43 = vld [vmem:[%s992_s22 + $0x18] sm:$0xff]  ;;  %v258_v44 = vld [vmem:[%s992_s22 + $0x40] sm:$0xff] }
  0x17   : > { %v340_v35 = vsel %vm314_vm0, %v306_v30, 0  ;;  %v259_v45 = vld [vmem:[%s992_s22 + $0x48] sm:$0xff]  ;;  %v268_v46 = vmul.f32 0.125, %v252_v42  ;;  %v269_v47 = vmul.f32 0.125, %v253_v43  ;;  %v274_v48 = vmul.f32 0.125, %v258_v44  ;;  %v254_v52 = vld [vmem:[%s992_s22 + $0x20] sm:$0xff] }
  0x18   : > { %v282_v40 = vpack.c.bf16 %v267_v37, %v266_v36  ;;  %v285_v41 = vpack.c.bf16 %v273_v39, %v272_v38  ;;  %v275_v49 = vmul.f32 0.125, %v259_v45  ;;  %v255_v53 = vld [vmem:[%s992_s22 + $0x28] sm:$0xff]  ;;  %v260_v54 = vld [vmem:[%s992_s22 + $0x50] sm:$0xff]  ;;  %v261_v55 = vld [vmem:[%s992_s22 + $0x58] sm:$0xff]  ;;  %v270_v56 = vmul.f32 0.125, %v254_v52 }
  0x19   : > { %v283_v50 = vpack.c.bf16 %v269_v47, %v268_v46  ;;  %v271_v57 = vmul.f32 0.125, %v255_v53  ;;  %v276_v58 = vmul.f32 0.125, %v260_v54  ;;  %v277_v59 = vmul.f32 0.125, %v261_v55  ;;  %v262_v62 = vld [vmem:[%s992_s22 + $0x60] sm:$0xff]  ;;  %v263_v63 = vld [vmem:[%s992_s22 + $0x68] sm:$0xff]  ;;  %v264_v3 = vld [vmem:[%s992_s22 + $0x70] sm:$0xff] }
  0x1a   : > { %v286_v51 = vpack.c.bf16 %v275_v49, %v274_v48  ;;  %v278_v0 = vmul.f32 0.125, %v262_v62  ;;  %v279_v1 = vmul.f32 0.125, %v263_v63  ;;  %v265_v4 = vld [vmem:[%s992_s22 + $0x78] sm:$0xff]  ;;  %v280_v5 = vmul.f32 0.125, %v264_v3  ;;  %v546_v20 = vld [vmem:[%s1052_s25 + $0x70] sm:$0xff]  ;;  %v544_v22 = vld [vmem:[%s1052_s25 + $0x60] sm:$0xff] }
  0x1b   : > { %364 = vmatpush.bf16.xpose.msra.mxu0 %v358_v7  ;;  %792 = vmatpush.bf16.xpose.msra.mxu2 %v358_v7  ;;  %v284_v60 = vpack.c.bf16 %v271_v57, %v270_v56  ;;  %v287_v61 = vpack.c.bf16 %v277_v59, %v276_v58  ;;  %v281_v6 = vmul.f32 0.125, %v265_v4  ;;  %v547_v21 = vld [vmem:[%s1052_s25 + $0x78] sm:$0xff]  ;;  %v545_v24 = vld [vmem:[%s1052_s25 + $0x68] sm:$0xff]  ;;  %v542_v26 = vld [vmem:[%s1052_s25 + $0x50] sm:$0xff] }
  0x1c   : > { %v288_v2 = vpack.c.bf16 %v279_v1, %v278_v0  ;;  %v554_v25 = vpack.c.bf16 %v545_v24, %v544_v22  ;;  %v540_v33 = vld [vmem:[%s1052_s25 + $0x40] sm:$0xff]  ;;  %v541_v34 = vld [vmem:[%s1052_s25 + $0x48] sm:$0xff]  ;;  %v538_v36 = vld [vmem:[%s1052_s25 + $0x30] sm:$0xff] }
  0x1d   : > { %v289_v7 = vpack.c.bf16 %v281_v6, %v280_v5  ;;  %v539_v37 = vld [vmem:[%s1052_s25 + $0x38] sm:$0xff]  ;;  %v536_v39 = vld [vmem:[%s1052_s25 + $0x20] sm:$0xff]  ;;  %v534_v42 = vld [vmem:[%s1052_s25 + $0x10] sm:$0xff] }
  0x1e   : > { %v551_v38 = vpack.c.bf16 %v539_v37, %v538_v36  ;;  %v535_v43 = vld [vmem:[%s1052_s25 + $0x18] sm:$0xff]  ;;  %v532_v45 = vld [vmem:[%s1052_s25] sm:$0xff]  ;;  %v533_v46 = vld [vmem:[%s1052_s25 + $0x8] sm:$0xff] }
  0x1f   : > { %v549_v44 = vpack.c.bf16 %v535_v43, %v534_v42  ;;  %v548_v47 = vpack.c.bf16 %v533_v46, %v532_v45 }
  0x23   : > { %365 = vmatpush.bf16.xpose.msra.mxu0 %v355_v11  ;;  %793 = vmatpush.bf16.xpose.msra.mxu2 %v355_v11 }
  0x2b   : > { %366 = vmatpush.bf16.xpose.msra.mxu0 %v352_v15  ;;  %794 = vmatpush.bf16.xpose.msra.mxu2 %v352_v15 }
  0x33   : > { %367 = vmatpush.bf16.xpose.msra.mxu0 %v349_v19  ;;  %795 = vmatpush.bf16.xpose.msra.mxu2 %v349_v19 }
  0x3b   : > { %368 = vmatpush.bf16.xpose.msra.mxu0 %v346_v23  ;;  %796 = vmatpush.bf16.xpose.msra.mxu2 %v346_v23  ;;  %v555_v23 = vpack.c.bf16 %v547_v21, %v546_v20 }
  0x3d   : > { %556 = vmatpush.bf16.msra.mxu1 %v555_v23  ;;  %799 = vmatpush.bf16.msra.mxu3 %v555_v23 }
  0x41   : > { %557 = vmatpush.bf16.msra.mxu1 %v554_v25  ;;  %800 = vmatpush.bf16.msra.mxu3 %v554_v25 }
  0x43   : > { %369 = vmatpush.bf16.xpose.msra.mxu0 %v343_v27  ;;  %797 = vmatpush.bf16.xpose.msra.mxu2 %v343_v27  ;;  %v543_v27 = vld [vmem:[%s1052_s25 + $0x58] sm:$0xff] }
  0x44   : > { %v553_v29 = vpack.c.bf16 %v543_v27, %v542_v26 }
  0x46   : > { %558 = vmatpush.bf16.msra.mxu1 %v553_v29  ;;  %801 = vmatpush.bf16.msra.mxu3 %v553_v29 }
  0x4b   : > { %370 = vmatpush.bf16.xpose.msra.mxu0 %v340_v35  ;;  %798 = vmatpush.bf16.xpose.msra.mxu2 %v340_v35  ;;  %v552_v35 = vpack.c.bf16 %v541_v34, %v540_v33 }
  0x4d   : > { %559 = vmatpush.bf16.msra.mxu1 %v552_v35  ;;  %802 = vmatpush.bf16.msra.mxu3 %v552_v35 }
  0x51   : > { %560 = vmatpush.bf16.msra.mxu1 %v551_v38  ;;  %803 = vmatpush.bf16.msra.mxu3 %v551_v38 }
  0x52   : > { %777 = vmatmul.msk.bf16.vlgmr.msra.gmra.mxu0 %vm314_vm0, %v282_v40  ;;  %780 = vmatmul.msk.bf16.vlgmr.msra.gmra.mxu2 %vm314_vm0, %v285_v41  ;;  %v537_v40 = vld [vmem:[%s1052_s25 + $0x28] sm:$0xff] }
  0x53   : > { %v550_v41 = vpack.c.bf16 %v537_v40, %v536_v39 }
  0x55   : > { %561 = vmatpush.bf16.msra.mxu1 %v550_v41  ;;  %804 = vmatpush.bf16.msra.mxu3 %v550_v41 }
  0x59   : > { %562 = vmatpush.bf16.msra.mxu1 %v549_v44  ;;  %805 = vmatpush.bf16.msra.mxu3 %v549_v44 }
  0x5d   : > { %563 = vmatpush.bf16.msra.mxu1 %v548_v47  ;;  %806 = vmatpush.bf16.msra.mxu3 %v548_v47 }
  0x62   : > { %778 = vmatmul.msk.bf16.gmra.mxu0 %vm314_vm0, %v283_v50  ;;  %781 = vmatmul.msk.bf16.gmra.mxu2 %vm314_vm0, %v286_v51 }
  0x72   : > { %779 = vmatmul.msk.bf16.gmra.mxu0 %vm314_vm0, %v284_v60  ;;  %782 = vmatmul.msk.bf16.gmra.mxu2 %vm314_vm0, %v287_v61 }
  0x82   : > { %783 = vmatmul.msk.bf16.gmra.mxu2 %vm314_vm0, %v288_v2 }
  0x92   : > { %784 = vmatmul.msk.bf16.gmra.mxu2 %vm314_vm0, %v289_v7 }
  0xcf   : > { %v1019_v8 = vpop.f32.mrf.mxu0 }
  0xd0   : > { %412 = vmax.xlane.f32.xlu0 %v1019_v8 }
  0xd5   : > { %v1022_v9 = vpop.f32.mrf.mxu2 }
  0xd7   : > { %v1024_v10 = vpop.f32.mrf.mxu0 }
  0xd8   : > { %414 = vmax.xlane.f32.xlu0 %v1024_v10 }
  0xdd   : > { %v1027_v11 = vpop.f32.mrf.mxu2 }
  0xdf   : > { %v1029_v12 = vpop.f32.mrf.mxu0 }
  0xe0   : > { %416 = vmax.xlane.f32.xlu1 %v1029_v12 }
  0xe5   : > { %v1032_v13 = vpop.f32.mrf.mxu2 }
  0xe7   : > { %v1034_v14 = vpop.f32.mrf.mxu0 }
  0xe8   : > { %418 = vmax.xlane.f32.xlu1 %v1034_v14 }
  0xed   : > { %v1037_v15 = vpop.f32.mrf.mxu2 }
  0xef   : > { %v1039_v16 = vpop.f32.mrf.mxu0 }
  0xf0   : > { %420 = vmax.xlane.f32.xlu0 %v1039_v16 }
  0xf5   : > { %v1042_v17 = vpop.f32.mrf.mxu2 }
  0xf6   : > { %432 = vmax.xlane.f32.xlu2 %v1042_v17 }
  0xf7   : > { %v1045_v18 = vpop.f32.mrf.mxu0 }
  0xf8   : > { %422 = vmax.xlane.f32.xlu1 %v1045_v18 }
  0xfd   : > { %v1054_v19 = vpop.f32.mrf.mxu2 }
  0xfe   : > { %434 = vmax.xlane.f32.xlu2 %v1054_v19 }
 0x100   : > { %424 = vmax.xlane.f32.xlu1 %v1022_v9 }
 0x105   : > { %v1064_v28 = vpop.f32.mrf.mxu2 }
 0x106   : > { %436 = vmax.xlane.f32.xlu2 %v1064_v28 }
 0x10d   : > { %v1067_v30 = vpop.f32.mrf.mxu2 }
 0x10e   : > { %426 = vmax.xlane.f32.xlu2 %v1027_v11  ;;  %438 = vmax.xlane.f32.xlu0 %v1067_v30 }
 0x115   : > { %v1071_v31 = vpop.f32.mrf.mxu2 }
 0x116   : > { %428 = vmax.xlane.f32.xlu2 %v1032_v13  ;;  %440 = vmax.xlane.f32.xlu0 %v1071_v31 }
 0x11d   : > { %v1075_v32 = vpop.f32.mrf.mxu2 }
 0x11e   : > { %430 = vmax.xlane.f32.xlu0 %v1037_v15  ;;  %442 = vmax.xlane.f32.xlu1 %v1075_v32 }
 0x143   : > { %v413_v48 = vpop.xlane.xlu0 %412 }
 0x144   : > { %v444_v49 = vsub.f32 %v1019_v8, %v413_v48 }
 0x146   : > { %v460_v50 = vmul.f32 1.442695, %v444_v49 }
 0x148   : > { %831 = vpow2.f32 %v460_v50 }
 0x14b   : > { %v415_v51 = vpop.xlane.xlu0 %414 }
 0x14c   : > { %v445_v52 = vsub.f32 %v1024_v10, %v415_v51 }
 0x14e   : > { %v832_v53 = vpop.eup %831  ;;  %v462_v54 = vmul.f32 1.442695, %v445_v52 }
 0x14f   : > { %492 = vadd.xlane.f32.xlu1 %v832_v53 }
 0x150   : > { %833 = vpow2.f32 %v462_v54 }
 0x153   : > { %v417_v55 = vpop.xlane.xlu1 %416 }
 0x154   : > { %v446_v56 = vsub.f32 %v1029_v12, %v417_v55 }
 0x156   : > { %v834_v57 = vpop.eup %833  ;;  %v464_v58 = vmul.f32 1.442695, %v446_v56 }
 0x157   : > { %494 = vadd.xlane.f32.xlu2 %v834_v57  ;;  %v524_v59 = vpack.c.bf16 %v834_v57, %v832_v53 }
 0x158   : > { %835 = vpow2.f32 %v464_v58 }
 0x159   : > { %564 = vmatmul.bf16.vlgmr.msra.gmra.mxu1 %v524_v59 }
 0x15b   : > { %v419_v60 = vpop.xlane.xlu1 %418 }
 0x15c   : > { %v447_v61 = vsub.f32 %v1034_v14, %v419_v60 }
 0x15e   : > { %v836_v62 = vpop.eup %835  ;;  %v466_v63 = vmul.f32 1.442695, %v447_v61 }
 0x15f   : > { %496 = vadd.xlane.f32.xlu0 %v836_v62 }
 0x160   : > { %837 = vpow2.f32 %v466_v63 }
 0x163   : > { %v421_v0 = vpop.xlane.xlu0 %420 }
 0x164   : > { %v448_v2 = vsub.f32 %v1039_v16, %v421_v0 }
 0x166   : > { %v838_v1 = vpop.eup %837  ;;  %v468_v5 = vmul.f32 1.442695, %v448_v2 }
 0x167   : > { %v525_v3 = vpack.c.bf16 %v838_v1, %v836_v62 }
 0x168   : > { %839 = vpow2.f32 %v468_v5 }
 0x169   : > { %v433_v4 = vpop.xlane.xlu2 %432  ;;  %569 = vmatmul.bf16.gmra.mxu1 %v525_v3 }
 0x16a   : > { %v454_v8 = vsub.f32 %v1042_v17, %v433_v4 }
 0x16b   : > { %v423_v6 = vpop.xlane.xlu1 %422 }
 0x16c   : > { %v449_v7 = vsub.f32 %v1045_v18, %v423_v6  ;;  %v480_v12 = vmul.f32 1.442695, %v454_v8 }
 0x16e   : > { %v470_v10 = vmul.f32 1.442695, %v449_v7  ;;  %v840_v23 = vpop.eup %839 }
 0x170   : > { %841 = vpow2.f32 %v470_v10 }
 0x171   : > { %v435_v14 = vpop.xlane.xlu2 %434  ;;  %843 = vpow2.f32 %v480_v12 }
 0x172   : > { %v455_v20 = vsub.f32 %v1054_v19, %v435_v14 }
 0x173   : > { %v425_v21 = vpop.xlane.xlu1 %424 }
 0x174   : > { %v482_v22 = vmul.f32 1.442695, %v455_v20  ;;  %v450_v16 = vsub.f32 %v1022_v9, %v425_v21 }
 0x176   : > { %v842_v24 = vpop.eup %841  ;;  %845 = vpow2.f32 %v482_v22  ;;  %v472_v25 = vmul.f32 1.442695, %v450_v16 }
 0x177   : > { %v526_v26 = vpack.c.bf16 %v842_v24, %v840_v23  ;;  %v844_v17 = vpop.eup %843 }
 0x178   : > { %847 = vpow2.f32 %v472_v25 }
 0x179   : > { %v437_v18 = vpop.xlane.xlu2 %436  ;;  %574 = vmatmul.bf16.gmra.mxu1 %v526_v26 }
 0x17a   : > { %v456_v29 = vsub.f32 %v1064_v28, %v437_v18 }
 0x17c   : > { %v846_v27 = vpop.eup %845  ;;  %v484_v19 = vmul.f32 1.442695, %v456_v29 }
 0x17d   : > { %v529_v33 = vpack.c.bf16 %v846_v27, %v844_v17 }
 0x17e   : > { %v848_v34 = vpop.eup %847  ;;  %849 = vpow2.f32 %v484_v19 }
 0x17f   : > { %589 = vmatmul.bf16.vlgmr.msra.gmra.mxu3 %v529_v33  ;;  %504 = vadd.xlane.f32.xlu1 %v848_v34 }
 0x181   : > { %v427_v35 = vpop.xlane.xlu2 %426  ;;  %v439_v9 = vpop.xlane.xlu0 %438 }
 0x182   : > { %v451_v36 = vsub.f32 %v1027_v11, %v427_v35  ;;  %v457_v37 = vsub.f32 %v1067_v30, %v439_v9 }
 0x184   : > { %v474_v38 = vmul.f32 1.442695, %v451_v36  ;;  %v486_v39 = vmul.f32 1.442695, %v457_v37  ;;  %v850_v42 = vpop.eup %849 }
 0x186   : > { %851 = vpow2.f32 %v474_v38 }
 0x187   : > { %853 = vpow2.f32 %v486_v39  ;;  %498 = vadd.xlane.f32.xlu1 %v838_v1 }
 0x189   : > { %v429_v40 = vpop.xlane.xlu2 %428  ;;  %v441_v41 = vpop.xlane.xlu0 %440 }
 0x18a   : > { %v452_v28 = vsub.f32 %v1032_v13, %v429_v40  ;;  %v458_v46 = vsub.f32 %v1071_v31, %v441_v41 }
 0x18c   : > { %v852_v43 = vpop.eup %851  ;;  %v476_v44 = vmul.f32 1.442695, %v452_v28  ;;  %v488_v47 = vmul.f32 1.442695, %v458_v46 }
 0x18d   : > { %v854_v45 = vpop.eup %853  ;;  %506 = vadd.xlane.f32.xlu2 %v852_v43  ;;  %v527_v11 = vpack.c.bf16 %v852_v43, %v848_v34 }
 0x18e   : > { %855 = vpow2.f32 %v476_v44  ;;  %v530_v30 = vpack.c.bf16 %v854_v45, %v850_v42 }
 0x18f   : > { %579 = vmatmul.bf16.gmra.mxu1 %v527_v11  ;;  %857 = vpow2.f32 %v488_v47 }
 0x190   : > { %594 = vmatmul.bf16.gmra.mxu3 %v530_v30 }
 0x191   : > { %v431_v48 = vpop.xlane.xlu0 %430  ;;  %v443_v49 = vpop.xlane.xlu1 %442 }
 0x192   : > { %v453_v50 = vsub.f32 %v1037_v15, %v431_v48  ;;  %v459_v51 = vsub.f32 %v1075_v32, %v443_v49 }
 0x194   : > { %v856_v13 = vpop.eup %855  ;;  %v478_v52 = vmul.f32 1.442695, %v453_v50  ;;  %v490_v53 = vmul.f32 1.442695, %v459_v51 }
 0x195   : > { %508 = vadd.xlane.f32.xlu0 %v856_v13  ;;  %500 = vadd.xlane.f32.xlu2 %v840_v23  ;;  %v858_v31 = vpop.eup %857 }
 0x196   : > { %859 = vpow2.f32 %v478_v52 }
 0x197   : > { %861 = vpow2.f32 %v490_v53 }
 0x19c   : > { %v860_v54 = vpop.eup %859 }
 0x19d   : > { %v862_v55 = vpop.eup %861  ;;  %512 = vadd.xlane.f32.xlu2 %v844_v17  ;;  %502 = vadd.xlane.f32.xlu0 %v842_v24  ;;  %v528_v56 = vpack.c.bf16 %v860_v54, %v856_v13 }
 0x19e   : > { %510 = vadd.xlane.f32.xlu1 %v860_v54  ;;  %v531_v57 = vpack.c.bf16 %v862_v55, %v858_v31 }
 0x19f   : > { %584 = vmatmul.bf16.gmra.mxu1 %v528_v56 }
 0x1a0   : > { %599 = vmatmul.bf16.gmra.mxu3 %v531_v57 }
 0x1a5   : > { %518 = vadd.xlane.f32.xlu2 %v854_v45  ;;  %514 = vadd.xlane.f32.xlu0 %v846_v27 }
 0x1a6   : > { %516 = vadd.xlane.f32.xlu1 %v850_v42 }
 0x1ad   : > { %520 = vadd.xlane.f32.xlu0 %v858_v31 }
 0x1ae   : > { %522 = vadd.xlane.f32.xlu1 %v862_v55 }
 0x1c2   : > { %v493_v15 = vpop.xlane.xlu1 %492 }
 0x1c3   : > { %863 = vrcp.f32 %v493_v15 }
 0x1c9   : > { %v864_v58 = vpop.eup %863 }
 0x1ca   : > { %v495_v32 = vpop.xlane.xlu2 %494 }
 0x1cb   : > { %865 = vrcp.f32 %v495_v32 }
 0x1d1   : > { %v866_v62 = vpop.eup %865 }
 0x1d2   : > { %v497_v61 = vpop.xlane.xlu0 %496 }
 0x1d3   : > { %867 = vrcp.f32 %v497_v61 }
 0x1d6   : > { %v565_v59 = vpop.f32.mrf.mxu1 }
 0x1d7   : > { %v621_v60 = vmul.f32 %v864_v58, %v565_v59 }
 0x1d9   : > { %637 = vst.msk [vmem:[%s1109_s28] sm:$0xff] %vm314_vm0, %v621_v60  ;;  %v868_v1 = vpop.eup %867 }
 0x1de   : > { %v567_v63 = vpop.f32.mrf.mxu1 }
 0x1df   : > { %v622_v0 = vmul.f32 %v866_v62, %v567_v63 }
 0x1e1   : > { %638 = vst.msk [vmem:[%s1109_s28 + $0x8] sm:$0xff] %vm314_vm0, %v622_v0 }
 0x1e6   : > { %v570_v2 = vpop.f32.mrf.mxu1 }
 0x1e7   : > { %v623_v3 = vmul.f32 %v868_v1, %v570_v2 }
 0x1e9   : > { %639 = vst.msk [vmem:[%s1109_s28 + $0x10] sm:$0xff] %vm314_vm0, %v623_v3 }
 0x1ee   : > { %v572_v4 = vpop.f32.mrf.mxu1 }
 0x1f2   : > { %v505_v5 = vpop.xlane.xlu1 %504 }
 0x1f6   : > { %v575_v6 = vpop.f32.mrf.mxu1 }
 0x1fa   : > { %v499_v7 = vpop.xlane.xlu1 %498 }
 0x1fb   : > { %869 = vrcp.f32 %v499_v7 }
 0x1fc   : > { %871 = vrcp.f32 %v505_v5 }
 0x1fe   : > { %v577_v20 = vpop.f32.mrf.mxu1 }
 0x200   : > { %v507_v8 = vpop.xlane.xlu2 %506 }
 0x201   : > { %v870_v10 = vpop.eup %869 }
 0x202   : > { %v624_v12 = vmul.f32 %v870_v10, %v572_v4  ;;  %v590_v14 = vpop.f32.mrf.mxu3  ;;  %v872_v23 = vpop.eup %871 }
 0x204   : > { %640 = vst.msk [vmem:[%s1109_s28 + $0x18] sm:$0xff] %vm314_vm0, %v624_v12 }
 0x208   : > { %v501_v21 = vpop.xlane.xlu2 %500  ;;  %v509_v22 = vpop.xlane.xlu0 %508 }
 0x209   : > { %873 = vrcp.f32 %v501_v21 }
 0x20a   : > { %v592_v16 = vpop.f32.mrf.mxu3  ;;  %875 = vrcp.f32 %v507_v8 }
 0x20c   : > { %v580_v24 = vpop.f32.mrf.mxu1 }
 0x20d   : > { %v627_v25 = vmul.f32 %v872_v23, %v580_v24 }
 0x20f   : > { %v874_v26 = vpop.eup %873  ;;  %643 = vst.msk [vmem:[%s1109_s28 + $0x30] sm:$0xff] %vm314_vm0, %v627_v25 }
 0x210   : > { %v625_v18 = vmul.f32 %v874_v26, %v575_v6  ;;  %v513_v17 = vpop.xlane.xlu2 %512  ;;  %v503_v27 = vpop.xlane.xlu0 %502 }
 0x211   : > { %877 = vrcp.f32 %v513_v17  ;;  %v511_v29 = vpop.xlane.xlu1 %510  ;;  %v876_v34 = vpop.eup %875 }
 0x212   : > { %641 = vst.msk [vmem:[%s1109_s28 + $0x20] sm:$0xff] %vm314_vm0, %v625_v18  ;;  %879 = vrcp.f32 %v503_v27 }
 0x213   : > { %v595_v33 = vpop.f32.mrf.mxu3  ;;  %881 = vrcp.f32 %v509_v22 }
 0x214   : > { %v582_v19 = vpop.f32.mrf.mxu1 }
 0x215   : > { %v628_v35 = vmul.f32 %v876_v34, %v582_v19 }
 0x217   : > { %v878_v9 = vpop.eup %877  ;;  %644 = vst.msk [vmem:[%s1109_s28 + $0x38] sm:$0xff] %vm314_vm0, %v628_v35 }
 0x218   : > { %v880_v36 = vpop.eup %879  ;;  %v631_v37 = vmul.f32 %v878_v9, %v590_v14  ;;  %v519_v38 = vpop.xlane.xlu2 %518 }
 0x219   : > { %v515_v39 = vpop.xlane.xlu0 %514  ;;  %v626_v40 = vmul.f32 %v880_v36, %v577_v20  ;;  %883 = vrcp.f32 %v519_v38  ;;  %v517_v41 = vpop.xlane.xlu1 %516 }
 0x21a   : > { %647 = vst.msk [vmem:[%s1109_s28 + $0x50] sm:$0xff] %vm314_vm0, %v631_v37  ;;  %885 = vrcp.f32 %v515_v39  ;;  %v882_v42 = vpop.eup %881 }
 0x21b   : > { %642 = vst.msk [vmem:[%s1109_s28 + $0x28] sm:$0xff] %vm314_vm0, %v626_v40  ;;  %887 = vrcp.f32 %v517_v41  ;;  %v597_v28 = vpop.f32.mrf.mxu3 }
 0x21c   : > { %v585_v43 = vpop.f32.mrf.mxu1  ;;  %889 = vrcp.f32 %v511_v29 }
 0x21d   : > { %v629_v44 = vmul.f32 %v882_v42, %v585_v43 }
 0x21f   : > { %v884_v45 = vpop.eup %883  ;;  %645 = vst.msk [vmem:[%s1109_s28 + $0x40] sm:$0xff] %vm314_vm0, %v629_v44 }
 0x220   : > { %v886_v46 = vpop.eup %885  ;;  %v634_v11 = vmul.f32 %v884_v45, %v597_v28 }
 0x221   : > { %v521_v30 = vpop.xlane.xlu0 %520  ;;  %v888_v47 = vpop.eup %887  ;;  %v632_v48 = vmul.f32 %v886_v46, %v592_v16 }
 0x222   : > { %891 = vrcp.f32 %v521_v30  ;;  %v633_v49 = vmul.f32 %v888_v47, %v595_v33  ;;  %650 = vst.msk [vmem:[%s1109_s28 + $0x68] sm:$0xff] %vm314_vm0, %v634_v11  ;;  %v523_v50 = vpop.xlane.xlu1 %522  ;;  %v890_v13 = vpop.eup %889 }
 0x223   : > { %648 = vst.msk [vmem:[%s1109_s28 + $0x58] sm:$0xff] %vm314_vm0, %v632_v48  ;;  %v600_v51 = vpop.f32.mrf.mxu3  ;;  %893 = vrcp.f32 %v523_v50 }
 0x224   : > { %649 = vst.msk [vmem:[%s1109_s28 + $0x60] sm:$0xff] %vm314_vm0, %v633_v49  ;;  %v587_v52 = vpop.f32.mrf.mxu1 }
 0x225   : > { %v630_v53 = vmul.f32 %v890_v13, %v587_v52 }
 0x227   : > { %646 = vst.msk [vmem:[%s1109_s28 + $0x48] sm:$0xff] %vm314_vm0, %v630_v53 }
 0x228   : > { %v892_v31 = vpop.eup %891 }
 0x229   : > { %v635_v54 = vmul.f32 %v892_v31, %v600_v51  ;;  %v894_v55 = vpop.eup %893 }
 0x22b   : > { %651 = vst.msk [vmem:[%s1109_s28 + $0x70] sm:$0xff] %vm314_vm0, %v635_v54  ;;  %v602_v56 = vpop.f32.mrf.mxu3 }
 0x22c   : > { %v636_v57 = vmul.f32 %v894_v55, %v602_v56 }
 0x22e   : > { %652 = vst.msk [vmem:[%s1109_s28 + $0x78] sm:$0xff] %vm314_vm0, %v636_v57 }
 0x22f PF: > { %s13_s14 = sadd.s32 1, %s917_s14   ;;  %s1156_s12 = smov %s913_s13 }
 0x230   : > { %p10_p5 = scmp.ge.s32.totalorder %s13_s14, 10   ;;  %s1157_s13 = smov %s1159_s15 }
 0x232   :  { %12 = sbr.rel (!%p10_p5) target bundleno = 2 (0x2), region = 68 }

</bundles_post_ra>
